<compile_context>
chip_gen: v5e
topology: v5e:2x2
jax: 0.10.0
libtpu: 0.0.40
codegen_flags: <defaults>
</compile_context>

<pallas_src>
import jax
import jax.numpy as jnp
from jax.experimental import pallas as pl
from jax.experimental.pallas import tpu as pltpu

_LANES = 128
_MAX_BLOCK_ROWS = 4096      # (4096, 128) f32 tile = 2 MiB; 4x tile (in+out, 2-buf) = 8 MiB
_FASTPATH_ELEMS = 16384     # below this a pallas_call is pure launch overhead -> plain XLA


def affine_kernel(x_ref, w_ref, b_ref, o_ref):
    # x_ref / o_ref: (block_rows, 128) lane-dense VMEM tiles of the batch.
    # w_ref / b_ref: (1, 1) scalars in SMEM (scalar path, folded into the VPU op).
    o_ref[...] = x_ref[...] * w_ref[0, 0] + b_ref[0, 0]


def _sublane_multiple(dtype):
    # f32 -> 8, bf16/f16 -> 16, int8/fp8 -> 32 (packed sublanes).
    return max(8, 32 // dtype.itemsize)


def _choose_blocking(rows, sub):
    """Pick (block_rows, num_blocks) for `rows` 128-lane rows.

    Prefers an even num_blocks >= 4 (megacore sharding + pipelining) with
    sublane-aligned blocks <= _MAX_BLOCK_ROWS. Rows that do not fit the exact
    split are left for the XLA tail path (never padded)."""
    nb = max(4, pl.cdiv(rows, _MAX_BLOCK_ROWS))
    if nb % 2:
        nb += 1
    if rows < nb * sub:
        nb = 2 if rows >= 2 * sub else 1
    if nb == 1:
        br = (rows // sub) * sub
        return (br, 1) if br else (0, 0)
    # Exact, zero-leftover split when possible.
    if rows % nb == 0 and (rows // nb) % sub == 0 and (rows // nb) <= _MAX_BLOCK_ROWS:
        return rows // nb, nb
    br = (rows // nb) // sub * sub
    if br == 0:
        br = (rows // sub) * sub
        return (br, 1) if br else (0, 0)
    return br, nb


def simple_nn_forward(x, weight, bias, *, in_place=False):
    """y = x @ weight.T + bias for nn.Linear(1, 1).  x: (B, 1) -> (B, 1).

    Set in_place=True only when the caller donates x (e.g. jit donate_argnums);
    it adds input_output_aliases={0: 0} so the kernel writes over the input."""
    B, in_f = x.shape
    assert in_f == 1, "SimpleNN has in_features=1"
    dtype = x.dtype
    w2 = weight.reshape(1, 1).astype(dtype)
    b2 = bias.reshape(1, 1).astype(dtype)

    # Tiny-batch fast path: XLA fuses the scalar affine for free.
    if B < _FASTPATH_ELEMS:
        return x * w2 + b2

    sub = _sublane_multiple(dtype)
    rows = B // _LANES                       # whole 128-lane rows in the batch
    block_rows, num_blocks = _choose_blocking(rows, sub)
    if block_rows == 0:                      # defensive; unreachable above the threshold
        return x * w2 + b2
    rows_used = block_rows * num_blocks
    n_main = rows_used * _LANES

    x_flat = x.reshape(-1)
    if n_main == B:
        x2d = x_flat.reshape(rows_used, _LANES)          # pure reshape, no copy
    else:
        x2d = x_flat[:n_main].reshape(rows_used, _LANES)  # bulk only; tail handled below

    itemsize = dtype.itemsize
    main2d = pl.pallas_call(
        affine_kernel,
        out_shape=jax.ShapeDtypeStruct((rows_used, _LANES), dtype),
        grid=(num_blocks,),
        in_specs=[
            pl.BlockSpec((block_rows, _LANES), lambda i: (i, 0)),
            pl.BlockSpec(memory_space=pltpu.SMEM),   # weight scalar
            pl.BlockSpec(memory_space=pltpu.SMEM),   # bias scalar
        ],
        out_specs=pl.BlockSpec((block_rows, _LANES), lambda i: (i, 0)),
        compiler_params=pltpu.CompilerParams(
            dimension_semantics=("parallel",),
        ),
        cost_estimate=pl.CostEstimate(
            flops=2 * n_main,
            bytes_accessed=2 * itemsize * n_main,
            transcendentals=0,
        ),
        input_output_aliases=({0: 0} if in_place else {}),
    )(x2d, w2, b2)

    if n_main == B:
        return main2d.reshape(B, 1)

    # Ragged remainder (< one grid step of elements): plain XLA affine, then stitch.
    tail = x_flat[n_main:] * w2[0, 0] + b2[0, 0]
    return jnp.concatenate([main2d.reshape(-1), tail]).reshape(B, 1)


if __name__ == "__main__":
    key = jax.random.PRNGKey(0)
    kx, kw, kb, kx2, kx3 = jax.random.split(key, 5)

    # PyTorch nn.Linear(1, 1) parameter shapes: weight (1, 1), bias (1,).
    weight = jax.random.uniform(kw, (1, 1), jnp.float32, minval=-1.0, maxval=1.0)
    bias = jax.random.uniform(kb, (1,), jnp.float32, minval=-1.0, maxval=1.0)

    def ref(x):
        return x @ weight.T + bias

    # 1) Tiny batch (module's natural scale) -> XLA fast path.
    x_small = jax.random.normal(kx, (8, 1), jnp.float32)
    y_small = jax.block_until_ready(simple_nn_forward(x_small, weight, bias))
    assert y_small.shape == (8, 1)
    assert jnp.allclose(y_small, ref(x_small), atol=1e-6)

    # 2) 128-aligned batch -> Pallas kernel, zero-copy reshape, grid=(4,).
    x_big = jax.random.normal(kx2, (32768, 1), jnp.float32)
    y_big = jax.block_until_ready(simple_nn_forward(x_big, weight, bias))
    assert y_big.shape == (32768, 1)
    assert jnp.allclose(y_big, ref(x_big), atol=1e-6)

    # 3) Ragged batch -> Pallas kernel on the bulk + XLA tail (no full-array pad/slice).
    x_rag = jax.random.normal(kx3, (32845, 1), jnp.float32)
    y_rag = jax.block_until_ready(simple_nn_forward(x_rag, weight, bias))
    assert y_rag.shape == (32845, 1)
    assert jnp.allclose(y_rag, ref(x_rag), atol=1e-6)

    print("KERNEL_OK")
</pallas_src>

<mosaic_0001>
module attributes {stable_mosaic.version = 11 : i64} {
  func.func @affine_kernel(%arg0: i32, %arg1: memref<64x128xf32, #tpu.memory_space<vmem>>, %arg2: memref<1x1xf32, #tpu.memory_space<smem>>, %arg3: memref<1x1xf32, #tpu.memory_space<smem>>, %arg4: memref<64x128xf32, #tpu.memory_space<vmem>>) attributes {dimension_semantics = [#tpu.dimension_semantics<parallel>], iteration_bounds = array<i64: 4>, scalar_prefetch = 0 : i64, scratch_operands = 0 : i64, tpu.core_type = #tpu.core_type<tc>, window_params = [{transform_indices = @transform_0, window_bounds = array<i64: 64, 128>}, {transform_indices = @transform_1, window_bounds = array<i64: 1, 1>}, {transform_indices = @transform_2, window_bounds = array<i64: 1, 1>}, {transform_indices = @transform_3, window_bounds = array<i64: 64, 128>}]} {
    %c0 = arith.constant 0 : index
    %c0_0 = arith.constant 0 : index
    %0 = vector.load %arg1[%c0, %c0_0] : memref<64x128xf32, #tpu.memory_space<vmem>>, vector<64x128xf32>
    %c0_1 = arith.constant 0 : index
    %c0_2 = arith.constant 0 : index
    %1 = memref.load %arg2[%c0_1, %c0_2] : memref<1x1xf32, #tpu.memory_space<smem>>
    %2 = vector.broadcast %1 : f32 to vector<64x128xf32>
    %3 = arith.mulf %0, %2 : vector<64x128xf32>
    %c0_3 = arith.constant 0 : index
    %c0_4 = arith.constant 0 : index
    %4 = memref.load %arg3[%c0_3, %c0_4] : memref<1x1xf32, #tpu.memory_space<smem>>
    %5 = vector.broadcast %4 : f32 to vector<64x128xf32>
    %6 = arith.addf %3, %5 : vector<64x128xf32>
    %c0_5 = arith.constant 0 : index
    %c0_6 = arith.constant 0 : index
    %7 = vector.load %arg4[%c0_5, %c0_6] : memref<64x128xf32, #tpu.memory_space<vmem>>, vector<64x128xf32>
    tpu.vector_store %arg4[%c0_5, %c0_6], %6 {strides = array<i32>} : memref<64x128xf32, #tpu.memory_space<vmem>>, vector<64x128xf32>,
    return
  }
  func.func @transform_0(%arg0: i32) -> (i32, i32) {
    %c0_i32 = arith.constant 0 : i32
    %c0_i32_0 = arith.constant 0 : i32
    return %arg0, %c0_i32 : i32, i32
  }
  func.func @transform_1(%arg0: i32) -> (i32, i32) {
    %c0_i32 = arith.constant 0 : i32
    %c0_i32_0 = arith.constant 0 : i32
    %c0_i32_1 = arith.constant 0 : i32
    return %c0_i32, %c0_i32_0 : i32, i32
  }
  func.func @transform_2(%arg0: i32) -> (i32, i32) {
    %c0_i32 = arith.constant 0 : i32
    %c0_i32_0 = arith.constant 0 : i32
    %c0_i32_1 = arith.constant 0 : i32
    return %c0_i32, %c0_i32_0 : i32, i32
  }
  func.func @transform_3(%arg0: i32) -> (i32, i32) {
    %c0_i32 = arith.constant 0 : i32
    %c0_i32_0 = arith.constant 0 : i32
    return %arg0, %c0_i32 : i32, i32
  }
}

</mosaic_0001>

<bundles_post_ra>
// kernel: tpu_custom_call.1
= control target key start
LH: loop header
LB: loop body
LE: loop exit
PB: predicated region body
PF: predicated region fallthrough
CT: control target
= control target key end

     0   :  { %s643_s0 = inlined_call_operand.hbm [shape: f32[256,128], index: 0, kind: input, shape index: {}]   ;;  %s644_s1 = inlined_call_operand.<no memory space> [shape: f32[1,1], index: 1, kind: input, shape index: {}]   ;;  %s645_s2 = inlined_call_operand.<no memory space> [shape: f32[1,1], index: 2, kind: input, shape index: {}]   ;;  %s646_s3 = inlined_call_operand.hbm [shape: f32[256,128], index: 3, kind: output, shape index: {}]  }
   0x1   :  { %8 = sst [smem:[#allocation2]] %s644_s1 }
   0x2   :  { %9 = sst [smem:[#allocation3]] %s645_s2 }
   0x3   :  { %10 = vsyncpa [#allocation5], 0 }
   0x4   :  { %12 = vsyncpa [#allocation5 + $0x1], 0 }
   0x5   :  { %13 = vsyncpa [#allocation6], 0 }
   0x6   :  { %15 = vsyncpa [#allocation6 + $0x1], 0  ;;  %s514_s16 = smov 0   ;;  %s516_s17 = smov 0  }
   0x7   :  { %s518_s18 = smov 0   ;;  %s520_s19 = smov 0  }
   0x8 LB: > { %s535_s1 = sadd.s32 4294967295, %s482_s19   ;;  %s320_s2 = sadd.s32 4294967294, %s482_s19   ;;  %s482_s19 = sphi %s520_s19, %s655_s19   ;;  %s478_s18 = sphi %s518_s18, %s654_s18   ;;  %s474_s17 = sphi %s516_s17, %s653_s17   ;;  %s470_s16 = sphi %s514_s16, %s652_s16  }
   0x9   : > { %s539_s20 = sadd.s32 1, %s482_s19   ;;  %s28_s21 = sadd.s32 1, %s478_s18 }
   0xa   : > { %s25_s22 = ssub.s32 %s482_s19, %s539_s20  ;;  %p35_p0 = scmp.ne.s32.totalorder %s478_s18, %s474_s17 }
   0xb   : > { %p26_p1 = scmp.eq.s32.totalorder %s25_s22, 0  ;;  %p36_p2 = scmp.eq.s32.totalorder %s482_s19, 0 }
   0xc   : > { %p41_p3 = scmp.ne.s32.totalorder %s474_s17, %s470_s16  ;;  %p42_p4 = scmp.eq.s32.totalorder %s535_s1, 0 }
   0xd   : > { %s551_s23 = scalar_select %p26_p1, %s478_s18, %s28_s21  }
   0xe   : > { %p553_p5 = por %p36_p2, %p35_p0  ;;  %p557_p6 = por %p42_p4, %p41_p3 }
   0xf   : > { %p107_p7 = scmp.eq.s32.totalorder %s535_s1, 3  ;;  %p113_p8 = scmp.eq.s32.totalorder %s320_s2, 3 }
  0x10   : > { %p348_p9 = scmp.lt.s32.totalorder %s482_s19, 4  ;;  %s139_s28 = sand.u32 1, %s478_s18  }
  0x11   : > { %p563_p10 = por %p107_p7, %p35_p0  ;;  %p567_p11 = por %p113_p8, %p41_p3 }
  0x12   : > { %s334_s29 = sshll.u32 %s482_s19, 6  ;;  %s323_s30 = sshll.u32 %s139_s28, 6 }
  0x13   : > { %s148_s6 = scalar_lea.hbm %s643_s0, %s334_s29  ;;  %s143_s8 = scalar_lea.vmem [#allocation4], %s323_s30 }
  0x14   : > { %s149_s7 = sshll.u32 %s148_s6, 4  ;;  %s151_s9 = sshll.u32 %s143_s8, 4  ;;  %s150_s7 = int_to_ptr.hbm [resolvable:$true] %s149_s7  ;;  %s152_s9 = int_to_ptr.vmem [resolvable:$true] %s151_s9 }
  0x15   : > { %p578_p12 = pnand %p348_p9, %p553_p5  ;;  %p326_p13 = scmp.ge.s32.totalorder %s482_s19, 1 }
  0x16   : > { %p159_p0 = scmp.lt.s32.totalorder %s482_s19, 5  ;;  %s140_s11 = scalar_lea.sflag [#allocation5], %s139_s28 }
  0x17   : > { %s386_s12 = sshra.s32 %s150_s7, 4  ;;  %p390_p2 = pneg %p578_p12  ;;  %s387_s12 = int_to_ptr.hbm [resolvable:$true] %s386_s12 }
  0x18   : > { %s388_s13 = scalar_lea.hbm %s387_s12, 64  ;;  %s393_s2 = scalar_lea.hbm %s643_s0, 256 }
  0x19   : > { %p389_p1 = scmp.ne.s32.totalorder %s387_s12, %s388_s13  ;;  %p394_p5 = scmp.lt.s32.totalorder %s387_s12, %s643_s0 }
  0x1a   : > { %p395_p7 = scmp.lt.s32.totalorder %s393_s2, %s388_s13 }
  0x1b   : > { %p391_p3 = pnand %p390_p2, %p389_p1 }
  0x1c   : > { %p396_p8 = por %p395_p7, %p394_p5 }
  0x1d   : > { %p392_p4 = pneg %p391_p3 }
  0x1f   : > { %p397_p9 = pnand %p396_p8, %p392_p4 }
  0x21   : > { %400 = shalt.err (!%p397_p9)
}
  0x22   : > { %s484_s24 = smov 128   ;;  %s485_s28 = smov 8  }
  0x23   : > { %343 = dma.hbm_to_vmem [thread:$0]  (!%p578_p12), %s150_s7, 1024, %s152_s9, %s140_s11, %s484_s24, %s484_s24, %s485_s28  }
  0x24   : > { %p160_p1 = pnand %p326_p13, %p159_p0 }
  0x25   : > { %s599_s29 = sand.u32 (!%p160_p1), 1, %s474_s17  }
  0x26   : > { %163 = sbr.rel (%p160_p1) target bundleno = 66 (0x42), region = 32  ;;  %s327_s30 = sshll.u32 (!%p160_p1), %s599_s29, 6 }
  0x27   : > { %s166_s4 = scalar_lea.sflag (!%p160_p1), [#allocation5], %s599_s29  ;;  %s169_s5 = scalar_lea.vmem (!%p160_p1), [#allocation4], %s327_s30 }
  0x2b   : > { %461 = dma.done.wait (%p557_p6), %s166_s4, 1024  }
  0x2c   : > { %463 = vsyncadd (%p557_p6), %s166_s4, 4294966272  ;;  %s203_s6 = sld [smem:[#allocation2]]  ;;  %v195_v0 = vld [vmem:[%s169_s5] sm:$0xff]  ;;  %v196_v2 = vld [vmem:[%s169_s5 + $0x8] sm:$0xff]  ;;  %s335_s8 = sshll.u32 %s535_s1, 6 }
  0x2d   : > { %s213_s7 = sld [smem:[#allocation3]]  ;;  %v197_v3 = vld [vmem:[%s169_s5 + $0x10] sm:$0xff]  ;;  %v198_v8 = vld [vmem:[%s169_s5 + $0x18] sm:$0xff]  ;;  %v199_v9 = vld [vmem:[%s169_s5 + $0x20] sm:$0xff]  ;;  %s243_s10 = scalar_lea.hbm %s646_s3, %s335_s8 }
  0x2e   : > { %v200_v10 = vld [vmem:[%s169_s5 + $0x28] sm:$0xff]  ;;  %v201_v14 = vld [vmem:[%s169_s5 + $0x30] sm:$0xff]  ;;  %v202_v15 = vld [vmem:[%s169_s5 + $0x38] sm:$0xff]  ;;  %s192_s11 = scalar_lea.vmem [#allocation7], %s327_s30  ;;  %s246_s12 = sshll.u32 %s243_s10, 4  ;;  %s247_s12 = int_to_ptr.hbm [resolvable:$true] %s246_s12 }
  0x2f   : > { %s244_s1 = sshll.u32 %s192_s11, 4  ;;  %s232_s13 = scalar_lea.sflag [#allocation6], %s599_s29  ;;  %s245_s1 = int_to_ptr.vmem [resolvable:$true] %s244_s1 }
  0x30   : > { %s430_s14 = sshra.s32 %s247_s12, 4  ;;  %s436_s22 = scalar_lea.hbm %s646_s3, 256  ;;  %s431_s14 = int_to_ptr.hbm [resolvable:$true] %s430_s14 }
  0x31   : > { %s432_s15 = scalar_lea.hbm %s431_s14, 64  ;;  %p437_p0 = scmp.lt.s32.totalorder %s431_s14, %s646_s3 }
  0x32   : > { %v204_v1 = vstv %s203_s6  ;;  %p433_p6 = scmp.ne.s32.totalorder %s431_s14, %s432_s15  ;;  %p438_p2 = scmp.lt.s32.totalorder %s436_s22, %s432_s15 }
  0x33   : > { %v205_v4 = vmul.f32 %v204_v1, %v195_v0  ;;  %v214_v5 = vstv %s213_s7  ;;  %v206_v6 = vmul.f32 %v204_v1, %v196_v2  ;;  %v207_v7 = vmul.f32 %v204_v1, %v197_v3 }
  0x34   : > { %v208_v11 = vmul.f32 %v204_v1, %v198_v8  ;;  %v209_v12 = vmul.f32 %v204_v1, %v199_v9  ;;  %v210_v13 = vmul.f32 %v204_v1, %v200_v10  ;;  %v211_v19 = vmul.f32 %v204_v1, %v201_v14  ;;  %p434_p12 = pnand %p433_p6, %p563_p10  ;;  %p439_p3 = por %p438_p2, %p437_p0 }
  0x35   : > { %v215_v16 = vadd.f32 %v214_v5, %v205_v4  ;;  %v216_v17 = vadd.f32 %v214_v5, %v206_v6  ;;  %v217_v18 = vadd.f32 %v214_v5, %v207_v7  ;;  %v212_v21 = vmul.f32 %v204_v1, %v202_v15 }
  0x36   : > { %v218_v20 = vadd.f32 %v214_v5, %v208_v11  ;;  %v219_v22 = vadd.f32 %v214_v5, %v209_v12  ;;  %v220_v23 = vadd.f32 %v214_v5, %v210_v13  ;;  %v221_v24 = vadd.f32 %v214_v5, %v211_v19  ;;  %p435_p13 = pneg %p434_p12 }
  0x37   : > { %223 = vst [vmem:[%s192_s11] sm:$0xff] %v215_v16  ;;  %v222_v25 = vadd.f32 %v214_v5, %v212_v21 }
  0x38   : > { %224 = vst [vmem:[%s192_s11 + $0x8] sm:$0xff] %v216_v17  ;;  %p440_p4 = pnand %p439_p3, %p435_p13 }
  0x39   : > { %225 = vst [vmem:[%s192_s11 + $0x10] sm:$0xff] %v217_v18 }
  0x3a   : > { %226 = vst [vmem:[%s192_s11 + $0x18] sm:$0xff] %v218_v20 }
  0x3b   : > { %227 = vst [vmem:[%s192_s11 + $0x20] sm:$0xff] %v219_v22 }
  0x3c   : > { %228 = vst [vmem:[%s192_s11 + $0x28] sm:$0xff] %v220_v23 }
  0x3d   : > { %229 = vst [vmem:[%s192_s11 + $0x30] sm:$0xff] %v221_v24 }
  0x3e   : > { %230 = vst [vmem:[%s192_s11 + $0x38] sm:$0xff] %v222_v25 }
  0x3f   : > { %443 = shalt.err (!%p440_p4)
}
  0x40   : > { %s486_s29 = smov 128   ;;  %s487_s30 = smov 8  }
  0x41   : > { %338 = dma.vmem_to_hbm [thread:$0]  (%p563_p10), %s245_s1, 1024, %s247_s12, %s232_s13, %s486_s29, %s486_s29, %s487_s30  }
  0x42 PF: > { %p349_p5 = scmp.ge.s32.totalorder %s482_s19, 2  ;;  %s261_s4 = sand.u32 1, %s470_s16  }
  0x43   : > { %s262_s5 = scalar_lea.sflag [#allocation6], %s261_s4 }
  0x44   : > { %p345_p7 = pnand %p349_p5, %p567_p11 }
  0x46   : > { %p346_p8 = pneg %p345_p7 }
  0x48   : > { %465 = dma.done.wait (%p346_p8), %s262_s5, 1024  }
  0x49   : > { %467 = vsyncadd (%p346_p8), %s262_s5, 4294966272  ;;  %p18_p9 = scmp.ge.s32.totalorder %s539_s20, 6   ;;  %s652_s16 = smov %s474_s17 }
  0x4a   : > { %s653_s17 = smov %s478_s18  ;;  %s654_s18 = smov %s551_s23 }
  0x4b   : > { %s655_s19 = smov %s539_s20  ;;  %20 = sbr.rel (!%p18_p9) target bundleno = 8 (0x8), region = 77 }
  0x50   :  { %268 = vsyncpa [#allocation5], 1 }
  0x51   :  { %270 = vsyncpa [#allocation5 + $0x1], 1 }
  0x52   :  { %271 = vsyncpa [#allocation6], 1 }
  0x53   :  { %273 = vsyncpa [#allocation6 + $0x1], 1 }

</bundles_post_ra>
